<compile_context>
chip_gen: v6e
topology: v6e:2x2x1
jax: 0.10.0
libtpu: 0.0.40
codegen_flags: <defaults>
</compile_context>

<pallas_src>
import functools

import jax
import jax.numpy as jnp
from jax.experimental import pallas as pl
from jax.experimental.pallas import tpu as pltpu

_node_types = ('atom', 'disj', 'conj', 'count', 'sum', 'min', 'max')

# which "updater" handles each destination node type (mirrors __init__)
_UPDATER_MODE = {
    'atom': 'disj', 'disj': 'disj',          # DisjUpdater
    'conj': 'conj',                          # ConjUpdater
    'count': 'aggr_sum', 'sum': 'aggr_sum',  # AggrSumUpdater
    'min': 'aggr_min',                       # AggrMinUpdater
    'max': 'aggr_max',                       # AggrMaxUpdater
}

_NEG_BIG = -1e30
_POS_BIG = 1e30
_NEG_THR = -1e29   # w below this  == "no edge" sentinel (max modes)
_POS_THR = 1e29    # w above this  == "no edge" sentinel (min modes)

_TILE_D_MAX = 512      # dst nodes per tile (lanes)
_TILE_S_MAX = 2048     # src nodes per tile (sublanes, reduction axis)
_VMEM_LIMIT = 32 * 1024 * 1024   # explicit scoped-VMEM budget (safe on v5e/v6e/v7x)


def _round_up(v, m):
    return (v + m - 1) // m * m


# --------------------------------------------------------------------------
# Pallas kernel: tiled dense message passing for one edge type.
#   grid = (Nd_pad // TILE_D  [parallel],  Ns_pad // TILE_S  [arbitrary])
# --------------------------------------------------------------------------
def _mp_kernel(mode, w_ref, x_ref, deg_ref, g_ref, o_ref, acc_ref):
    k = pl.program_id(1)

    if mode in ('disj', 'aggr_max'):
        init = _NEG_BIG
    elif mode in ('conj', 'aggr_min'):
        init = _POS_BIG
    else:  # aggr_sum
        init = 0.0

    @pl.when(k == 0)
    def _():
        acc_ref[...] = jnp.full(acc_ref.shape, init, dtype=acc_ref.dtype)

    # widen bf16 -> f32 before any arithmetic (v5e has no bf16 VPU)
    w = w_ref[...].astype(jnp.float32)        # [TILE_S, TILE_D]
    x = x_ref[...]                            # [TILE_S, 1] f32
    msg = w * x                               # lane-broadcast of x

    if mode in ('disj', 'aggr_max'):
        msg = jnp.where(w > _NEG_THR, msg, _NEG_BIG)          # keep sentinel for non-edges
        acc_ref[...] = jnp.maximum(acc_ref[...],
                                   jnp.max(msg, axis=0, keepdims=True))
    elif mode in ('conj', 'aggr_min'):
        msg = jnp.where(w < _POS_THR, msg, _POS_BIG)
        acc_ref[...] = jnp.minimum(acc_ref[...],
                                   jnp.min(msg, axis=0, keepdims=True))
    else:  # aggr_sum: non-edges already hold 0 in w
        acc_ref[...] = acc_ref[...] + jnp.sum(msg, axis=0, keepdims=True)

    @pl.when(k == pl.num_programs(1) - 1)
    def _():
        agg = acc_ref[...]
        deg = deg_ref[...]
        if mode == 'disj':
            out = jnp.clip(jnp.where(deg > 0, agg, 0.0), 0.0, 1.0)
        elif mode == 'conj':
            out = jnp.clip(jnp.where(deg > 0, agg, 1.0), 0.0, 1.0)
        elif mode == 'aggr_sum':
            out = (agg >= g_ref[...]).astype(jnp.float32)
        else:  # aggr_min / aggr_max
            agg = jnp.where(deg > 0, agg, 0.0)
            out = (agg >= g_ref[...]).astype(jnp.float32)
        o_ref[...] = out


def message_passing(mode, x_src, num_dst, edge_index, edge_weight, guards=None):
    """Dense-adjacency message passing for one edge type, computed in Pallas.

    x_src:       [N_src, 1] float32
    edge_index:  [2, E] int32 (row 0 = src index, row 1 = dst index)
    edge_weight: [E] float32
    guards:      [N_dst, 1] float32 or None
    returns      [N_dst, 1] float32
    """
    n_src = int(x_src.shape[0])
    n_dst = int(num_dst)

    tile_d = min(_TILE_D_MAX, _round_up(n_dst, 128))
    tile_s = min(_TILE_S_MAX, _round_up(n_src, 16))   # bf16 sublane tile = 16
    nd_p = _round_up(n_dst, tile_d)
    ns_p = _round_up(n_src, tile_s)

    src = edge_index[0]
    dst = edge_index[1]
    ew = edge_weight.astype(jnp.float32)

    # ---- plain-JAX glue: scatter straight into the padded shape, sentinel
    # ---- baked into w (no separate mask operand, no build-then-pad copy).
    if mode in ('disj', 'aggr_max'):
        w = jnp.full((ns_p, nd_p), _NEG_BIG, jnp.float32).at[src, dst].max(ew)
    elif mode in ('conj', 'aggr_min'):
        w = jnp.full((ns_p, nd_p), _POS_BIG, jnp.float32).at[src, dst].min(ew)
    else:  # aggr_sum
        w = jnp.zeros((ns_p, nd_p), jnp.float32).at[src, dst].add(ew)
    w = w.astype(jnp.bfloat16)   # halve HBM bytes of the dominant operand

    x_p = jnp.zeros((ns_p, 1), jnp.float32).at[:n_src, :].set(
        x_src.astype(jnp.float32))
    deg = jnp.zeros((1, nd_p), jnp.float32).at[0, dst].add(1.0)
    g_p = jnp.zeros((1, nd_p), jnp.float32)
    if guards is not None:
        g_p = g_p.at[0, :n_dst].set(guards.astype(jnp.float32)[:, 0])

    grid = (nd_p // tile_d, ns_p // tile_s)

    out = pl.pallas_call(
        functools.partial(_mp_kernel, mode),
        out_shape=jax.ShapeDtypeStruct((1, nd_p), jnp.float32),
        grid_spec=pltpu.PrefetchScalarGridSpec(
            num_scalar_prefetch=0,
            grid=grid,
            in_specs=[
                pl.BlockSpec((tile_s, tile_d), lambda j, k: (k, j)),   # w
                pl.BlockSpec((tile_s, 1),      lambda j, k: (k, 0)),   # x
                pl.BlockSpec((1, tile_d),      lambda j, k: (0, j)),   # deg
                pl.BlockSpec((1, tile_d),      lambda j, k: (0, j)),   # guards
            ],
            out_specs=pl.BlockSpec((1, tile_d), lambda j, k: (0, j)),  # lane-dense out
            scratch_shapes=[pltpu.VMEM((1, tile_d), jnp.float32)],     # accumulator
        ),
        compiler_params=pltpu.CompilerParams(
            dimension_semantics=("parallel", "arbitrary"),
            vmem_limit_bytes=_VMEM_LIMIT,
        ),
    )(w, x_p, deg, g_p)

    return out[0, :n_dst].reshape(n_dst, 1)


# --------------------------------------------------------------------------
# ASNGNN forward (orchestration mirrors the PyTorch module, jitted as a whole)
# --------------------------------------------------------------------------
class NodeStore:
    def __init__(self, x, guards=None):
        self.x = x                       # [N, 1] float32
        self.guards = guards             # [N, 1] float32 or None
        self.num_nodes = int(x.shape[0])


class EdgeStore:
    def __init__(self, edge_index, edge_weight):
        self.edge_index = edge_index     # [2, E] int32
        self.edge_weight = edge_weight   # [E] float32


@functools.partial(jax.jit, static_argnums=(0,))
def _sweep(plan, xs, guards, edges, certain_atom_ids):
    """One full Gauss-Seidel sweep over all edge types (device-side)."""
    xs = dict(xs)
    converged = jnp.array(True)
    for edge_key, src_types, dst_types, mode, needs_guards in plan:
        x_src = jnp.concatenate([xs[s] for s in src_types], axis=0)
        num_dst = sum(xs[d].shape[0] for d in dst_types)
        g = (jnp.concatenate([guards[d] for d in dst_types], axis=0)
             if needs_guards else None)
        edge_index, edge_weight = edges[edge_key]
        # TODO(synk): the PyTorch updater also receives x_dst; internals unknown, unused here.
        x_prime_all = message_passing(mode, x_src, num_dst,
                                      edge_index, edge_weight, g)
        off = 0
        for d in dst_types:
            n = xs[d].shape[0]
            x_new = x_prime_all[off:off + n]
            off += n
            converged = jnp.logical_and(converged, jnp.allclose(xs[d], x_new))
            xs[d] = x_new            # Gauss-Seidel: later edge types see the update

    if certain_atom_ids is not None:
        xs['atom'] = xs['atom'].at[certain_atom_ids].set(1.0)
    return xs, converged


def asn_gnn_forward(node_dict, edge_dict, certain_atom_ids=None):
    plan = []
    for edge_type in edge_dict.keys():
        src_types = (tuple(edge_type[0].split('/'))
                     if edge_type[0] != '_' else _node_types)
        dst_types = tuple(edge_type[2].split('/'))
        mode = _UPDATER_MODE[dst_types[0]]
        needs_guards = dst_types[0] in _node_types[3:]
        plan.append((edge_type, src_types, dst_types, mode, needs_guards))
    plan = tuple(plan)

    xs = {nt: ns.x for nt, ns in node_dict.items()}
    guards = {nt: ns.guards for nt, ns in node_dict.items()}
    edges = {et: (es.edge_index, es.edge_weight) for et, es in edge_dict.items()}

    new_xs, converged = _sweep(plan, xs, guards, edges, certain_atom_ids)

    for nt, x in new_xs.items():
        node_dict[nt].x = x
    # single device->host sync per sweep
    return node_dict, bool(converged)


# --------------------------------------------------------------------------
if __name__ == "__main__":
    key = jax.random.PRNGKey(0)
    ks = list(jax.random.split(key, 24))

    num_nodes = {'atom': 6, 'disj': 4, 'conj': 5,
                 'count': 2, 'sum': 2, 'min': 2, 'max': 2}

    node_dict = {}
    for i, nt in enumerate(_node_types):
        n = num_nodes[nt]
        x = jax.random.uniform(ks[i], (n, 1), jnp.float32)
        guards = None
        if nt in _node_types[3:]:
            guards = jax.random.uniform(ks[7 + i], (n, 1), jnp.float32, 0.0, 2.0)
        node_dict[nt] = NodeStore(x, guards)

    def mk_edges(k, n_e, n_src, n_dst):
        k1, k2, k3 = jax.random.split(k, 3)
        src = jax.random.randint(k1, (n_e,), 0, n_src, jnp.int32)
        dst = jax.random.randint(k2, (n_e,), 0, n_dst, jnp.int32)
        w = jax.random.uniform(k3, (n_e,), jnp.float32, 0.5, 1.5)
        return EdgeStore(jnp.stack([src, dst], axis=0), w)

    total_nodes = sum(num_nodes.values())
    edge_dict = {
        ('atom', 'in_body', 'conj'):
            mk_edges(ks[15], 8, num_nodes['atom'], num_nodes['conj']),
        ('conj', 'supports', 'disj/atom'):
            mk_edges(ks[16], 10, num_nodes['conj'],
                     num_nodes['disj'] + num_nodes['atom']),
        ('_', 'feeds', 'count/sum'):
            mk_edges(ks[17], 12, total_nodes,
                     num_nodes['count'] + num_nodes['sum']),
        ('atom', 'in_aggr', 'min'):
            mk_edges(ks[18], 5, num_nodes['atom'], num_nodes['min']),
        ('atom', 'in_aggr', 'max'):
            mk_edges(ks[19], 5, num_nodes['atom'], num_nodes['max']),
    }

    certain_atom_ids = jnp.array([0, 2], dtype=jnp.int32)

    node_dict, converged = asn_gnn_forward(node_dict, edge_dict, certain_atom_ids)

    for nt in _node_types:
        jax.block_until_ready(node_dict[nt].x)

    assert node_dict['atom'].x.shape == (num_nodes['atom'], 1)
    assert bool(jnp.all(node_dict['atom'].x[certain_atom_ids] == 1.0))
    assert isinstance(converged, bool)

    print("KERNEL_OK")
</pallas_src>

<mosaic_0001>
module attributes {stable_mosaic.version = 11 : i64} {
  func.func private @main(%arg0: i32) attributes {dimension_semantics = [#tpu.dimension_semantics<core_parallel>], iteration_bounds = array<i64: 2>, tpu.core_type = #tpu.core_type<sc_scalar_subcore>, window_params = []} {
    return
  }
}

module attributes {stable_mosaic.version = 11 : i64} {
  func.func private @main(%arg0: i32) attributes {dimension_semantics = [#tpu.dimension_semantics<core_parallel>], iteration_bounds = array<i64: 2>, tpu.core_type = #tpu.core_type<sc_scalar_subcore>, window_params = []} {
    return
  }
}

module attributes {stable_mosaic.version = 11 : i64} {
  func.func @_mp_kernel(%arg0: i32, %arg1: i32, %arg2: memref<16x128xbf16, #tpu.memory_space<vmem>>, %arg3: memref<16x1xf32, #tpu.memory_space<vmem>>, %arg4: memref<1x128xf32, #tpu.memory_space<vmem>>, %arg5: memref<1x128xf32, #tpu.memory_space<vmem>>, %arg6: memref<1x128xf32, #tpu.memory_space<vmem>>, %arg7: memref<1x128xf32, #tpu.memory_space<vmem>>) attributes {dimension_semantics = [#tpu.dimension_semantics<parallel>, #tpu.dimension_semantics<arbitrary>], iteration_bounds = array<i64: 1, 1>, scalar_prefetch = 0 : i64, scratch_operands = 1 : i64, tpu.core_type = #tpu.core_type<tc>, window_params = [{transform_indices = @transform_0, window_bounds = array<i64: 16, 128>}, {transform_indices = @transform_1, window_bounds = array<i64: 16, 1>}, {transform_indices = @transform_2, window_bounds = array<i64: 1, 128>}, {transform_indices = @transform_3, window_bounds = array<i64: 1, 128>}, {transform_indices = @transform_4, window_bounds = array<i64: 1, 128>}]} {
    %c0_i32 = arith.constant 0 : i32
    %0 = arith.cmpi eq, %arg1, %c0_i32 : i32
    %1 = arith.extui %0 : i1 to i32
    %c0_i32_0 = arith.constant 0 : i32
    %2 = arith.cmpi ne, %1, %c0_i32_0 : i32
    scf.if %2 {
      %cst_12 = arith.constant 1.000000e+30 : f32
      %20 = vector.broadcast %cst_12 : f32 to vector<1x128xf32>
      %c0_13 = arith.constant 0 : index
      %c0_14 = arith.constant 0 : index
      %21 = vector.load %arg7[%c0_13, %c0_14] : memref<1x128xf32, #tpu.memory_space<vmem>>, vector<1x128xf32>
      tpu.vector_store %arg7[%c0_13, %c0_14], %20 {strides = array<i32>} : memref<1x128xf32, #tpu.memory_space<vmem>>, vector<1x128xf32>,
    } else {
    }
    %c0 = arith.constant 0 : index
    %c0_1 = arith.constant 0 : index
    %3 = vector.load %arg2[%c0, %c0_1] : memref<16x128xbf16, #tpu.memory_space<vmem>>, vector<16x128xbf16>
    %4 = arith.extf %3 : vector<16x128xbf16> to vector<16x128xf32>
    %c0_2 = arith.constant 0 : index
    %c0_3 = arith.constant 0 : index
    %5 = vector.load %arg3[%c0_2, %c0_3] : memref<16x1xf32, #tpu.memory_space<vmem>>, vector<16x1xf32>
    %6 = vector.broadcast %5 : vector<16x1xf32> to vector<16x128xf32>
    %7 = arith.mulf %4, %6 : vector<16x128xf32>
    %cst = arith.constant 1.000000e+29 : f32
    %8 = vector.broadcast %cst : f32 to vector<16x128xf32>
    %9 = arith.cmpf olt, %4, %8 : vector<16x128xf32>
    %cst_4 = arith.constant 1.000000e+30 : f32
    %10 = vector.broadcast %cst_4 : f32 to vector<16x128xf32>
    %11 = arith.select %9, %7, %10 : vector<16x128xi1>, vector<16x128xf32>
    %c0_5 = arith.constant 0 : index
    %c0_6 = arith.constant 0 : index
    %12 = vector.load %arg7[%c0_5, %c0_6] : memref<1x128xf32, #tpu.memory_space<vmem>>, vector<1x128xf32>
    %cst_7 = arith.constant dense<0x7F800000> : vector<128xf32>
    %13 = vector.multi_reduction <minimumf>, %11, %cst_7 [0] : vector<16x128xf32> to vector<128xf32>
    %14 = vector.shape_cast %13 : vector<128xf32> to vector<1x128xf32>
    %15 = arith.minimumf %12, %14 : vector<1x128xf32>
    %c0_8 = arith.constant 0 : index
    %c0_9 = arith.constant 0 : index
    %16 = vector.load %arg7[%c0_8, %c0_9] : memref<1x128xf32, #tpu.memory_space<vmem>>, vector<1x128xf32>
    tpu.vector_store %arg7[%c0_8, %c0_9], %15 {strides = array<i32>} : memref<1x128xf32, #tpu.memory_space<vmem>>, vector<1x128xf32>,
    %c0_i32_10 = arith.constant 0 : i32
    %17 = arith.cmpi eq, %arg1, %c0_i32_10 : i32
    %18 = arith.extui %17 : i1 to i32
    %c0_i32_11 = arith.constant 0 : i32
    %19 = arith.cmpi ne, %18, %c0_i32_11 : i32
    scf.if %19 {
      %c0_12 = arith.constant 0 : index
      %c0_13 = arith.constant 0 : index
      %20 = vector.load %arg7[%c0_12, %c0_13] : memref<1x128xf32, #tpu.memory_space<vmem>>, vector<1x128xf32>
      %c0_14 = arith.constant 0 : index
      %c0_15 = arith.constant 0 : index
      %21 = vector.load %arg4[%c0_14, %c0_15] : memref<1x128xf32, #tpu.memory_space<vmem>>, vector<1x128xf32>
      %cst_16 = arith.constant 0.000000e+00 : f32
      %22 = vector.broadcast %cst_16 : f32 to vector<1x128xf32>
      %23 = arith.cmpf ogt, %21, %22 : vector<1x128xf32>
      %cst_17 = arith.constant 1.000000e+00 : f32
      %24 = vector.broadcast %cst_17 : f32 to vector<1x128xf32>
      %25 = arith.select %23, %20, %24 : vector<1x128xi1>, vector<1x128xf32>
      %cst_18 = arith.constant 0.000000e+00 : f32
      %cst_19 = arith.constant 1.000000e+00 : f32
      %26 = vector.broadcast %cst_18 : f32 to vector<1x128xf32>
      %27 = arith.maximumf %26, %25 : vector<1x128xf32>
      %28 = vector.broadcast %cst_19 : f32 to vector<1x128xf32>
      %29 = arith.minimumf %28, %27 : vector<1x128xf32>
      %c0_20 = arith.constant 0 : index
      %c0_21 = arith.constant 0 : index
      %30 = vector.load %arg6[%c0_20, %c0_21] : memref<1x128xf32, #tpu.memory_space<vmem>>, vector<1x128xf32>
      tpu.vector_store %arg6[%c0_20, %c0_21], %29 {strides = array<i32>} : memref<1x128xf32, #tpu.memory_space<vmem>>, vector<1x128xf32>,
    } else {
    }
    return
  }
  func.func @transform_0(%arg0: i32, %arg1: i32) -> (i32, i32) {
    %c0_i32 = arith.constant 0 : i32
    return %arg1, %arg0 : i32, i32
  }
  func.func @transform_1(%arg0: i32, %arg1: i32) -> (i32, i32) {
    %c0_i32 = arith.constant 0 : i32
    %c0_i32_0 = arith.constant 0 : i32
    return %arg1, %c0_i32 : i32, i32
  }
  func.func @transform_2(%arg0: i32, %arg1: i32) -> (i32, i32) {
    %c0_i32 = arith.constant 0 : i32
    %c0_i32_0 = arith.constant 0 : i32
    return %c0_i32, %arg0 : i32, i32
  }
  func.func @transform_3(%arg0: i32, %arg1: i32) -> (i32, i32) {
    %c0_i32 = arith.constant 0 : i32
    %c0_i32_0 = arith.constant 0 : i32
    return %c0_i32, %arg0 : i32, i32
  }
  func.func @transform_4(%arg0: i32, %arg1: i32) -> (i32, i32) {
    %c0_i32 = arith.constant 0 : i32
    %c0_i32_0 = arith.constant 0 : i32
    return %c0_i32, %arg0 : i32, i32
  }
}

module attributes {stable_mosaic.version = 11 : i64} {
  func.func @_mp_kernel(%arg0: i32, %arg1: i32, %arg2: memref<16x128xbf16, #tpu.memory_space<vmem>>, %arg3: memref<16x1xf32, #tpu.memory_space<vmem>>, %arg4: memref<1x128xf32, #tpu.memory_space<vmem>>, %arg5: memref<1x128xf32, #tpu.memory_space<vmem>>, %arg6: memref<1x128xf32, #tpu.memory_space<vmem>>, %arg7: memref<1x128xf32, #tpu.memory_space<vmem>>) attributes {dimension_semantics = [#tpu.dimension_semantics<parallel>, #tpu.dimension_semantics<arbitrary>], iteration_bounds = array<i64: 1, 1>, scalar_prefetch = 0 : i64, scratch_operands = 1 : i64, tpu.core_type = #tpu.core_type<tc>, window_params = [{transform_indices = @transform_0, window_bounds = array<i64: 16, 128>}, {transform_indices = @transform_1, window_bounds = array<i64: 16, 1>}, {transform_indices = @transform_2, window_bounds = array<i64: 1, 128>}, {transform_indices = @transform_3, window_bounds = array<i64: 1, 128>}, {transform_indices = @transform_4, window_bounds = array<i64: 1, 128>}]} {
    %c0_i32 = arith.constant 0 : i32
    %0 = arith.cmpi eq, %arg1, %c0_i32 : i32
    %1 = arith.extui %0 : i1 to i32
    %c0_i32_0 = arith.constant 0 : i32
    %2 = arith.cmpi ne, %1, %c0_i32_0 : i32
    scf.if %2 {
      %cst_12 = arith.constant -1.000000e+30 : f32
      %20 = vector.broadcast %cst_12 : f32 to vector<1x128xf32>
      %c0_13 = arith.constant 0 : index
      %c0_14 = arith.constant 0 : index
      %21 = vector.load %arg7[%c0_13, %c0_14] : memref<1x128xf32, #tpu.memory_space<vmem>>, vector<1x128xf32>
      tpu.vector_store %arg7[%c0_13, %c0_14], %20 {strides = array<i32>} : memref<1x128xf32, #tpu.memory_space<vmem>>, vector<1x128xf32>,
    } else {
    }
    %c0 = arith.constant 0 : index
    %c0_1 = arith.constant 0 : index
    %3 = vector.load %arg2[%c0, %c0_1] : memref<16x128xbf16, #tpu.memory_space<vmem>>, vector<16x128xbf16>
    %4 = arith.extf %3 : vector<16x128xbf16> to vector<16x128xf32>
    %c0_2 = arith.constant 0 : index
    %c0_3 = arith.constant 0 : index
    %5 = vector.load %arg3[%c0_2, %c0_3] : memref<16x1xf32, #tpu.memory_space<vmem>>, vector<16x1xf32>
    %6 = vector.broadcast %5 : vector<16x1xf32> to vector<16x128xf32>
    %7 = arith.mulf %4, %6 : vector<16x128xf32>
    %cst = arith.constant -1.000000e+29 : f32
    %8 = vector.broadcast %cst : f32 to vector<16x128xf32>
    %9 = arith.cmpf ogt, %4, %8 : vector<16x128xf32>
    %cst_4 = arith.constant -1.000000e+30 : f32
    %10 = vector.broadcast %cst_4 : f32 to vector<16x128xf32>
    %11 = arith.select %9, %7, %10 : vector<16x128xi1>, vector<16x128xf32>
    %c0_5 = arith.constant 0 : index
    %c0_6 = arith.constant 0 : index
    %12 = vector.load %arg7[%c0_5, %c0_6] : memref<1x128xf32, #tpu.memory_space<vmem>>, vector<1x128xf32>
    %cst_7 = arith.constant dense<0xFF800000> : vector<128xf32>
    %13 = vector.multi_reduction <maximumf>, %11, %cst_7 [0] : vector<16x128xf32> to vector<128xf32>
    %14 = vector.shape_cast %13 : vector<128xf32> to vector<1x128xf32>
    %15 = arith.maximumf %12, %14 : vector<1x128xf32>
    %c0_8 = arith.constant 0 : index
    %c0_9 = arith.constant 0 : index
    %16 = vector.load %arg7[%c0_8, %c0_9] : memref<1x128xf32, #tpu.memory_space<vmem>>, vector<1x128xf32>
    tpu.vector_store %arg7[%c0_8, %c0_9], %15 {strides = array<i32>} : memref<1x128xf32, #tpu.memory_space<vmem>>, vector<1x128xf32>,
    %c0_i32_10 = arith.constant 0 : i32
    %17 = arith.cmpi eq, %arg1, %c0_i32_10 : i32
    %18 = arith.extui %17 : i1 to i32
    %c0_i32_11 = arith.constant 0 : i32
    %19 = arith.cmpi ne, %18, %c0_i32_11 : i32
    scf.if %19 {
      %c0_12 = arith.constant 0 : index
      %c0_13 = arith.constant 0 : index
      %20 = vector.load %arg7[%c0_12, %c0_13] : memref<1x128xf32, #tpu.memory_space<vmem>>, vector<1x128xf32>
      %c0_14 = arith.constant 0 : index
      %c0_15 = arith.constant 0 : index
      %21 = vector.load %arg4[%c0_14, %c0_15] : memref<1x128xf32, #tpu.memory_space<vmem>>, vector<1x128xf32>
      %cst_16 = arith.constant 0.000000e+00 : f32
      %22 = vector.broadcast %cst_16 : f32 to vector<1x128xf32>
      %23 = arith.cmpf ogt, %21, %22 : vector<1x128xf32>
      %cst_17 = arith.constant 0.000000e+00 : f32
      %24 = vector.broadcast %cst_17 : f32 to vector<1x128xf32>
      %25 = arith.select %23, %20, %24 : vector<1x128xi1>, vector<1x128xf32>
      %cst_18 = arith.constant 0.000000e+00 : f32
      %cst_19 = arith.constant 1.000000e+00 : f32
      %26 = vector.broadcast %cst_18 : f32 to vector<1x128xf32>
      %27 = arith.maximumf %26, %25 : vector<1x128xf32>
      %28 = vector.broadcast %cst_19 : f32 to vector<1x128xf32>
      %29 = arith.minimumf %28, %27 : vector<1x128xf32>
      %c0_20 = arith.constant 0 : index
      %c0_21 = arith.constant 0 : index
      %30 = vector.load %arg6[%c0_20, %c0_21] : memref<1x128xf32, #tpu.memory_space<vmem>>, vector<1x128xf32>
      tpu.vector_store %arg6[%c0_20, %c0_21], %29 {strides = array<i32>} : memref<1x128xf32, #tpu.memory_space<vmem>>, vector<1x128xf32>,
    } else {
    }
    return
  }
  func.func @transform_0(%arg0: i32, %arg1: i32) -> (i32, i32) {
    %c0_i32 = arith.constant 0 : i32
    return %arg1, %arg0 : i32, i32
  }
  func.func @transform_1(%arg0: i32, %arg1: i32) -> (i32, i32) {
    %c0_i32 = arith.constant 0 : i32
    %c0_i32_0 = arith.constant 0 : i32
    return %arg1, %c0_i32 : i32, i32
  }
  func.func @transform_2(%arg0: i32, %arg1: i32) -> (i32, i32) {
    %c0_i32 = arith.constant 0 : i32
    %c0_i32_0 = arith.constant 0 : i32
    return %c0_i32, %arg0 : i32, i32
  }
  func.func @transform_3(%arg0: i32, %arg1: i32) -> (i32, i32) {
    %c0_i32 = arith.constant 0 : i32
    %c0_i32_0 = arith.constant 0 : i32
    return %c0_i32, %arg0 : i32, i32
  }
  func.func @transform_4(%arg0: i32, %arg1: i32) -> (i32, i32) {
    %c0_i32 = arith.constant 0 : i32
    %c0_i32_0 = arith.constant 0 : i32
    return %c0_i32, %arg0 : i32, i32
  }
}

module attributes {stable_mosaic.version = 11 : i64} {
  func.func @_mp_kernel(%arg0: i32, %arg1: i32, %arg2: memref<32x128xbf16, #tpu.memory_space<vmem>>, %arg3: memref<32x1xf32, #tpu.memory_space<vmem>>, %arg4: memref<1x128xf32, #tpu.memory_space<vmem>>, %arg5: memref<1x128xf32, #tpu.memory_space<vmem>>, %arg6: memref<1x128xf32, #tpu.memory_space<vmem>>, %arg7: memref<1x128xf32, #tpu.memory_space<vmem>>) attributes {dimension_semantics = [#tpu.dimension_semantics<parallel>, #tpu.dimension_semantics<arbitrary>], iteration_bounds = array<i64: 1, 1>, scalar_prefetch = 0 : i64, scratch_operands = 1 : i64, tpu.core_type = #tpu.core_type<tc>, window_params = [{transform_indices = @transform_0, window_bounds = array<i64: 32, 128>}, {transform_indices = @transform_1, window_bounds = array<i64: 32, 1>}, {transform_indices = @transform_2, window_bounds = array<i64: 1, 128>}, {transform_indices = @transform_3, window_bounds = array<i64: 1, 128>}, {transform_indices = @transform_4, window_bounds = array<i64: 1, 128>}]} {
    %c0_i32 = arith.constant 0 : i32
    %0 = arith.cmpi eq, %arg1, %c0_i32 : i32
    %1 = arith.extui %0 : i1 to i32
    %c0_i32_0 = arith.constant 0 : i32
    %2 = arith.cmpi ne, %1, %c0_i32_0 : i32
    scf.if %2 {
      %cst_10 = arith.constant 0.000000e+00 : f32
      %16 = vector.broadcast %cst_10 : f32 to vector<1x128xf32>
      %c0_11 = arith.constant 0 : index
      %c0_12 = arith.constant 0 : index
      %17 = vector.load %arg7[%c0_11, %c0_12] : memref<1x128xf32, #tpu.memory_space<vmem>>, vector<1x128xf32>
      tpu.vector_store %arg7[%c0_11, %c0_12], %16 {strides = array<i32>} : memref<1x128xf32, #tpu.memory_space<vmem>>, vector<1x128xf32>,
    } else {
    }
    %c0 = arith.constant 0 : index
    %c0_1 = arith.constant 0 : index
    %3 = vector.load %arg2[%c0, %c0_1] : memref<32x128xbf16, #tpu.memory_space<vmem>>, vector<32x128xbf16>
    %4 = arith.extf %3 : vector<32x128xbf16> to vector<32x128xf32>
    %c0_2 = arith.constant 0 : index
    %c0_3 = arith.constant 0 : index
    %5 = vector.load %arg3[%c0_2, %c0_3] : memref<32x1xf32, #tpu.memory_space<vmem>>, vector<32x1xf32>
    %6 = vector.broadcast %5 : vector<32x1xf32> to vector<32x128xf32>
    %7 = arith.mulf %4, %6 : vector<32x128xf32>
    %c0_4 = arith.constant 0 : index
    %c0_5 = arith.constant 0 : index
    %8 = vector.load %arg7[%c0_4, %c0_5] : memref<1x128xf32, #tpu.memory_space<vmem>>, vector<1x128xf32>
    %cst = arith.constant dense<0.000000e+00> : vector<128xf32>
    %9 = vector.multi_reduction <add>, %7, %cst [0] : vector<32x128xf32> to vector<128xf32>
    %10 = vector.shape_cast %9 : vector<128xf32> to vector<1x128xf32>
    %11 = arith.addf %8, %10 : vector<1x128xf32>
    %c0_6 = arith.constant 0 : index
    %c0_7 = arith.constant 0 : index
    %12 = vector.load %arg7[%c0_6, %c0_7] : memref<1x128xf32, #tpu.memory_space<vmem>>, vector<1x128xf32>
    tpu.vector_store %arg7[%c0_6, %c0_7], %11 {strides = array<i32>} : memref<1x128xf32, #tpu.memory_space<vmem>>, vector<1x128xf32>,
    %c0_i32_8 = arith.constant 0 : i32
    %13 = arith.cmpi eq, %arg1, %c0_i32_8 : i32
    %14 = arith.extui %13 : i1 to i32
    %c0_i32_9 = arith.constant 0 : i32
    %15 = arith.cmpi ne, %14, %c0_i32_9 : i32
    scf.if %15 {
      %c0_10 = arith.constant 0 : index
      %c0_11 = arith.constant 0 : index
      %16 = vector.load %arg7[%c0_10, %c0_11] : memref<1x128xf32, #tpu.memory_space<vmem>>, vector<1x128xf32>
      %c0_12 = arith.constant 0 : index
      %c0_13 = arith.constant 0 : index
      %17 = vector.load %arg5[%c0_12, %c0_13] : memref<1x128xf32, #tpu.memory_space<vmem>>, vector<1x128xf32>
      %18 = arith.cmpf oge, %16, %17 : vector<1x128xf32>
      %19 = arith.extui %18 : vector<1x128xi1> to vector<1x128xi32>
      %20 = arith.sitofp %19 : vector<1x128xi32> to vector<1x128xf32>
      %c0_14 = arith.constant 0 : index
      %c0_15 = arith.constant 0 : index
      %21 = vector.load %arg6[%c0_14, %c0_15] : memref<1x128xf32, #tpu.memory_space<vmem>>, vector<1x128xf32>
      tpu.vector_store %arg6[%c0_14, %c0_15], %20 {strides = array<i32>} : memref<1x128xf32, #tpu.memory_space<vmem>>, vector<1x128xf32>,
    } else {
    }
    return
  }
  func.func @transform_0(%arg0: i32, %arg1: i32) -> (i32, i32) {
    %c0_i32 = arith.constant 0 : i32
    return %arg1, %arg0 : i32, i32
  }
  func.func @transform_1(%arg0: i32, %arg1: i32) -> (i32, i32) {
    %c0_i32 = arith.constant 0 : i32
    %c0_i32_0 = arith.constant 0 : i32
    return %arg1, %c0_i32 : i32, i32
  }
  func.func @transform_2(%arg0: i32, %arg1: i32) -> (i32, i32) {
    %c0_i32 = arith.constant 0 : i32
    %c0_i32_0 = arith.constant 0 : i32
    return %c0_i32, %arg0 : i32, i32
  }
  func.func @transform_3(%arg0: i32, %arg1: i32) -> (i32, i32) {
    %c0_i32 = arith.constant 0 : i32
    %c0_i32_0 = arith.constant 0 : i32
    return %c0_i32, %arg0 : i32, i32
  }
  func.func @transform_4(%arg0: i32, %arg1: i32) -> (i32, i32) {
    %c0_i32 = arith.constant 0 : i32
    %c0_i32_0 = arith.constant 0 : i32
    return %c0_i32, %arg0 : i32, i32
  }
}

module attributes {stable_mosaic.version = 11 : i64} {
  func.func @_mp_kernel(%arg0: i32, %arg1: i32, %arg2: memref<16x128xbf16, #tpu.memory_space<vmem>>, %arg3: memref<16x1xf32, #tpu.memory_space<vmem>>, %arg4: memref<1x128xf32, #tpu.memory_space<vmem>>, %arg5: memref<1x128xf32, #tpu.memory_space<vmem>>, %arg6: memref<1x128xf32, #tpu.memory_space<vmem>>, %arg7: memref<1x128xf32, #tpu.memory_space<vmem>>) attributes {dimension_semantics = [#tpu.dimension_semantics<parallel>, #tpu.dimension_semantics<arbitrary>], iteration_bounds = array<i64: 1, 1>, scalar_prefetch = 0 : i64, scratch_operands = 1 : i64, tpu.core_type = #tpu.core_type<tc>, window_params = [{transform_indices = @transform_0, window_bounds = array<i64: 16, 128>}, {transform_indices = @transform_1, window_bounds = array<i64: 16, 1>}, {transform_indices = @transform_2, window_bounds = array<i64: 1, 128>}, {transform_indices = @transform_3, window_bounds = array<i64: 1, 128>}, {transform_indices = @transform_4, window_bounds = array<i64: 1, 128>}]} {
    %c0_i32 = arith.constant 0 : i32
    %0 = arith.cmpi eq, %arg1, %c0_i32 : i32
    %1 = arith.extui %0 : i1 to i32
    %c0_i32_0 = arith.constant 0 : i32
    %2 = arith.cmpi ne, %1, %c0_i32_0 : i32
    scf.if %2 {
      %cst_12 = arith.constant -1.000000e+30 : f32
      %20 = vector.broadcast %cst_12 : f32 to vector<1x128xf32>
      %c0_13 = arith.constant 0 : index
      %c0_14 = arith.constant 0 : index
      %21 = vector.load %arg7[%c0_13, %c0_14] : memref<1x128xf32, #tpu.memory_space<vmem>>, vector<1x128xf32>
      tpu.vector_store %arg7[%c0_13, %c0_14], %20 {strides = array<i32>} : memref<1x128xf32, #tpu.memory_space<vmem>>, vector<1x128xf32>,
    } else {
    }
    %c0 = arith.constant 0 : index
    %c0_1 = arith.constant 0 : index
    %3 = vector.load %arg2[%c0, %c0_1] : memref<16x128xbf16, #tpu.memory_space<vmem>>, vector<16x128xbf16>
    %4 = arith.extf %3 : vector<16x128xbf16> to vector<16x128xf32>
    %c0_2 = arith.constant 0 : index
    %c0_3 = arith.constant 0 : index
    %5 = vector.load %arg3[%c0_2, %c0_3] : memref<16x1xf32, #tpu.memory_space<vmem>>, vector<16x1xf32>
    %6 = vector.broadcast %5 : vector<16x1xf32> to vector<16x128xf32>
    %7 = arith.mulf %4, %6 : vector<16x128xf32>
    %cst = arith.constant -1.000000e+29 : f32
    %8 = vector.broadcast %cst : f32 to vector<16x128xf32>
    %9 = arith.cmpf ogt, %4, %8 : vector<16x128xf32>
    %cst_4 = arith.constant -1.000000e+30 : f32
    %10 = vector.broadcast %cst_4 : f32 to vector<16x128xf32>
    %11 = arith.select %9, %7, %10 : vector<16x128xi1>, vector<16x128xf32>
    %c0_5 = arith.constant 0 : index
    %c0_6 = arith.constant 0 : index
    %12 = vector.load %arg7[%c0_5, %c0_6] : memref<1x128xf32, #tpu.memory_space<vmem>>, vector<1x128xf32>
    %cst_7 = arith.constant dense<0xFF800000> : vector<128xf32>
    %13 = vector.multi_reduction <maximumf>, %11, %cst_7 [0] : vector<16x128xf32> to vector<128xf32>
    %14 = vector.shape_cast %13 : vector<128xf32> to vector<1x128xf32>
    %15 = arith.maximumf %12, %14 : vector<1x128xf32>
    %c0_8 = arith.constant 0 : index
    %c0_9 = arith.constant 0 : index
    %16 = vector.load %arg7[%c0_8, %c0_9] : memref<1x128xf32, #tpu.memory_space<vmem>>, vector<1x128xf32>
    tpu.vector_store %arg7[%c0_8, %c0_9], %15 {strides = array<i32>} : memref<1x128xf32, #tpu.memory_space<vmem>>, vector<1x128xf32>,
    %c0_i32_10 = arith.constant 0 : i32
    %17 = arith.cmpi eq, %arg1, %c0_i32_10 : i32
    %18 = arith.extui %17 : i1 to i32
    %c0_i32_11 = arith.constant 0 : i32
    %19 = arith.cmpi ne, %18, %c0_i32_11 : i32
    scf.if %19 {
      %c0_12 = arith.constant 0 : index
      %c0_13 = arith.constant 0 : index
      %20 = vector.load %arg7[%c0_12, %c0_13] : memref<1x128xf32, #tpu.memory_space<vmem>>, vector<1x128xf32>
      %c0_14 = arith.constant 0 : index
      %c0_15 = arith.constant 0 : index
      %21 = vector.load %arg4[%c0_14, %c0_15] : memref<1x128xf32, #tpu.memory_space<vmem>>, vector<1x128xf32>
      %cst_16 = arith.constant 0.000000e+00 : f32
      %22 = vector.broadcast %cst_16 : f32 to vector<1x128xf32>
      %23 = arith.cmpf ogt, %21, %22 : vector<1x128xf32>
      %cst_17 = arith.constant 0.000000e+00 : f32
      %24 = vector.broadcast %cst_17 : f32 to vector<1x128xf32>
      %25 = arith.select %23, %20, %24 : vector<1x128xi1>, vector<1x128xf32>
      %c0_18 = arith.constant 0 : index
      %c0_19 = arith.constant 0 : index
      %26 = vector.load %arg5[%c0_18, %c0_19] : memref<1x128xf32, #tpu.memory_space<vmem>>, vector<1x128xf32>
      %27 = arith.cmpf oge, %25, %26 : vector<1x128xf32>
      %28 = arith.extui %27 : vector<1x128xi1> to vector<1x128xi32>
      %29 = arith.sitofp %28 : vector<1x128xi32> to vector<1x128xf32>
      %c0_20 = arith.constant 0 : index
      %c0_21 = arith.constant 0 : index
      %30 = vector.load %arg6[%c0_20, %c0_21] : memref<1x128xf32, #tpu.memory_space<vmem>>, vector<1x128xf32>
      tpu.vector_store %arg6[%c0_20, %c0_21], %29 {strides = array<i32>} : memref<1x128xf32, #tpu.memory_space<vmem>>, vector<1x128xf32>,
    } else {
    }
    return
  }
  func.func @transform_0(%arg0: i32, %arg1: i32) -> (i32, i32) {
    %c0_i32 = arith.constant 0 : i32
    return %arg1, %arg0 : i32, i32
  }
  func.func @transform_1(%arg0: i32, %arg1: i32) -> (i32, i32) {
    %c0_i32 = arith.constant 0 : i32
    %c0_i32_0 = arith.constant 0 : i32
    return %arg1, %c0_i32 : i32, i32
  }
  func.func @transform_2(%arg0: i32, %arg1: i32) -> (i32, i32) {
    %c0_i32 = arith.constant 0 : i32
    %c0_i32_0 = arith.constant 0 : i32
    return %c0_i32, %arg0 : i32, i32
  }
  func.func @transform_3(%arg0: i32, %arg1: i32) -> (i32, i32) {
    %c0_i32 = arith.constant 0 : i32
    %c0_i32_0 = arith.constant 0 : i32
    return %c0_i32, %arg0 : i32, i32
  }
  func.func @transform_4(%arg0: i32, %arg1: i32) -> (i32, i32) {
    %c0_i32 = arith.constant 0 : i32
    %c0_i32_0 = arith.constant 0 : i32
    return %c0_i32, %arg0 : i32, i32
  }
}

module attributes {stable_mosaic.version = 11 : i64} {
  func.func @_mp_kernel(%arg0: i32, %arg1: i32, %arg2: memref<16x128xbf16, #tpu.memory_space<vmem>>, %arg3: memref<16x1xf32, #tpu.memory_space<vmem>>, %arg4: memref<1x128xf32, #tpu.memory_space<vmem>>, %arg5: memref<1x128xf32, #tpu.memory_space<vmem>>, %arg6: memref<1x128xf32, #tpu.memory_space<vmem>>, %arg7: memref<1x128xf32, #tpu.memory_space<vmem>>) attributes {dimension_semantics = [#tpu.dimension_semantics<parallel>, #tpu.dimension_semantics<arbitrary>], iteration_bounds = array<i64: 1, 1>, scalar_prefetch = 0 : i64, scratch_operands = 1 : i64, tpu.core_type = #tpu.core_type<tc>, window_params = [{transform_indices = @transform_0, window_bounds = array<i64: 16, 128>}, {transform_indices = @transform_1, window_bounds = array<i64: 16, 1>}, {transform_indices = @transform_2, window_bounds = array<i64: 1, 128>}, {transform_indices = @transform_3, window_bounds = array<i64: 1, 128>}, {transform_indices = @transform_4, window_bounds = array<i64: 1, 128>}]} {
    %c0_i32 = arith.constant 0 : i32
    %0 = arith.cmpi eq, %arg1, %c0_i32 : i32
    %1 = arith.extui %0 : i1 to i32
    %c0_i32_0 = arith.constant 0 : i32
    %2 = arith.cmpi ne, %1, %c0_i32_0 : i32
    scf.if %2 {
      %cst_12 = arith.constant 1.000000e+30 : f32
      %20 = vector.broadcast %cst_12 : f32 to vector<1x128xf32>
      %c0_13 = arith.constant 0 : index
      %c0_14 = arith.constant 0 : index
      %21 = vector.load %arg7[%c0_13, %c0_14] : memref<1x128xf32, #tpu.memory_space<vmem>>, vector<1x128xf32>
      tpu.vector_store %arg7[%c0_13, %c0_14], %20 {strides = array<i32>} : memref<1x128xf32, #tpu.memory_space<vmem>>, vector<1x128xf32>,
    } else {
    }
    %c0 = arith.constant 0 : index
    %c0_1 = arith.constant 0 : index
    %3 = vector.load %arg2[%c0, %c0_1] : memref<16x128xbf16, #tpu.memory_space<vmem>>, vector<16x128xbf16>
    %4 = arith.extf %3 : vector<16x128xbf16> to vector<16x128xf32>
    %c0_2 = arith.constant 0 : index
    %c0_3 = arith.constant 0 : index
    %5 = vector.load %arg3[%c0_2, %c0_3] : memref<16x1xf32, #tpu.memory_space<vmem>>, vector<16x1xf32>
    %6 = vector.broadcast %5 : vector<16x1xf32> to vector<16x128xf32>
    %7 = arith.mulf %4, %6 : vector<16x128xf32>
    %cst = arith.constant 1.000000e+29 : f32
    %8 = vector.broadcast %cst : f32 to vector<16x128xf32>
    %9 = arith.cmpf olt, %4, %8 : vector<16x128xf32>
    %cst_4 = arith.constant 1.000000e+30 : f32
    %10 = vector.broadcast %cst_4 : f32 to vector<16x128xf32>
    %11 = arith.select %9, %7, %10 : vector<16x128xi1>, vector<16x128xf32>
    %c0_5 = arith.constant 0 : index
    %c0_6 = arith.constant 0 : index
    %12 = vector.load %arg7[%c0_5, %c0_6] : memref<1x128xf32, #tpu.memory_space<vmem>>, vector<1x128xf32>
    %cst_7 = arith.constant dense<0x7F800000> : vector<128xf32>
    %13 = vector.multi_reduction <minimumf>, %11, %cst_7 [0] : vector<16x128xf32> to vector<128xf32>
    %14 = vector.shape_cast %13 : vector<128xf32> to vector<1x128xf32>
    %15 = arith.minimumf %12, %14 : vector<1x128xf32>
    %c0_8 = arith.constant 0 : index
    %c0_9 = arith.constant 0 : index
    %16 = vector.load %arg7[%c0_8, %c0_9] : memref<1x128xf32, #tpu.memory_space<vmem>>, vector<1x128xf32>
    tpu.vector_store %arg7[%c0_8, %c0_9], %15 {strides = array<i32>} : memref<1x128xf32, #tpu.memory_space<vmem>>, vector<1x128xf32>,
    %c0_i32_10 = arith.constant 0 : i32
    %17 = arith.cmpi eq, %arg1, %c0_i32_10 : i32
    %18 = arith.extui %17 : i1 to i32
    %c0_i32_11 = arith.constant 0 : i32
    %19 = arith.cmpi ne, %18, %c0_i32_11 : i32
    scf.if %19 {
      %c0_12 = arith.constant 0 : index
      %c0_13 = arith.constant 0 : index
      %20 = vector.load %arg7[%c0_12, %c0_13] : memref<1x128xf32, #tpu.memory_space<vmem>>, vector<1x128xf32>
      %c0_14 = arith.constant 0 : index
      %c0_15 = arith.constant 0 : index
      %21 = vector.load %arg4[%c0_14, %c0_15] : memref<1x128xf32, #tpu.memory_space<vmem>>, vector<1x128xf32>
      %cst_16 = arith.constant 0.000000e+00 : f32
      %22 = vector.broadcast %cst_16 : f32 to vector<1x128xf32>
      %23 = arith.cmpf ogt, %21, %22 : vector<1x128xf32>
      %cst_17 = arith.constant 0.000000e+00 : f32
      %24 = vector.broadcast %cst_17 : f32 to vector<1x128xf32>
      %25 = arith.select %23, %20, %24 : vector<1x128xi1>, vector<1x128xf32>
      %c0_18 = arith.constant 0 : index
      %c0_19 = arith.constant 0 : index
      %26 = vector.load %arg5[%c0_18, %c0_19] : memref<1x128xf32, #tpu.memory_space<vmem>>, vector<1x128xf32>
      %27 = arith.cmpf oge, %25, %26 : vector<1x128xf32>
      %28 = arith.extui %27 : vector<1x128xi1> to vector<1x128xi32>
      %29 = arith.sitofp %28 : vector<1x128xi32> to vector<1x128xf32>
      %c0_20 = arith.constant 0 : index
      %c0_21 = arith.constant 0 : index
      %30 = vector.load %arg6[%c0_20, %c0_21] : memref<1x128xf32, #tpu.memory_space<vmem>>, vector<1x128xf32>
      tpu.vector_store %arg6[%c0_20, %c0_21], %29 {strides = array<i32>} : memref<1x128xf32, #tpu.memory_space<vmem>>, vector<1x128xf32>,
    } else {
    }
    return
  }
  func.func @transform_0(%arg0: i32, %arg1: i32) -> (i32, i32) {
    %c0_i32 = arith.constant 0 : i32
    return %arg1, %arg0 : i32, i32
  }
  func.func @transform_1(%arg0: i32, %arg1: i32) -> (i32, i32) {
    %c0_i32 = arith.constant 0 : i32
    %c0_i32_0 = arith.constant 0 : i32
    return %arg1, %c0_i32 : i32, i32
  }
  func.func @transform_2(%arg0: i32, %arg1: i32) -> (i32, i32) {
    %c0_i32 = arith.constant 0 : i32
    %c0_i32_0 = arith.constant 0 : i32
    return %c0_i32, %arg0 : i32, i32
  }
  func.func @transform_3(%arg0: i32, %arg1: i32) -> (i32, i32) {
    %c0_i32 = arith.constant 0 : i32
    %c0_i32_0 = arith.constant 0 : i32
    return %c0_i32, %arg0 : i32, i32
  }
  func.func @transform_4(%arg0: i32, %arg1: i32) -> (i32, i32) {
    %c0_i32 = arith.constant 0 : i32
    %c0_i32_0 = arith.constant 0 : i32
    return %c0_i32, %arg0 : i32, i32
  }
}

</mosaic_0001>

<bundles_post_ra>
// kernel: _sweep.5
= control target key start
LH: loop header
LB: loop body
LE: loop exit
PB: predicated region body
PF: predicated region fallthrough
CT: control target
= control target key end

     0   :  { %v75_v0 = vmov 0   ;;  %v76_v2 = vmov 1e+30   ;;  %s117_s1 = inlined_call_operand.vmem [shape: f32[16,1], index: 1, kind: input, shape index: {}]   ;;  %s118_s3 = inlined_call_operand.vmem [shape: f32[1,128], index: 3, kind: input, shape index: {}]   ;;  %s119_s0 = inlined_call_operand.vmem [shape: bf16[16,128], index: 0, kind: input, shape index: {}]   ;;  %s120_s2 = inlined_call_operand.vmem [shape: f32[1,128], index: 2, kind: input, shape index: {}]   ;;  %s121_s4 = inlined_call_operand.vmem [shape: f32[1,128], index: 4, kind: output, shape index: {}]  }
   0x1   :  { %74 = vset.pattern.permute.xlu0 %v75_v0  ;;  %v26_v1 = vld [vmem:[%s117_s1] sm:$0xff]  ;;  %21 = vst [vmem:[#allocation2] sm:$0x1] %v76_v2  ;;  %v27_v3 = vld [vmem:[%s117_s1 + $0x8] sm:$0xff] }
   0x2   :  { %30 = vperm.xlu0 %74, %v26_v1   ;;  %v69_v4 = vld [vmem:[%s119_s0] sm:$0xff]  }
   0x3   :  { %v70_v5 = vunpack.c.l.bf16 %v69_v4  ;;  %v71_v7 = vunpack.c.h.bf16 %v69_v4  ;;  %v58_v22 = vld [vmem:[%s120_s2] sm:$0x1] }
   0x4   :  { %vm59_vm2 = vcmp.gt.f32.partialorder %v58_v22, 0.0 }
   0x5   :  { %vm40_vm0 = vcmp.lt.f32.partialorder %v70_v5, 1e+29  ;;  %vm41_vm1 = vcmp.lt.f32.partialorder %v71_v7, 1e+29 }
   0x6   :  { %35 = vperm.xlu0 %74, %v27_v3  }
   0x8   :  { %v44_v19 = vld [vmem:[#allocation2] sm:$0x1] }
  0x7d   :  { %v31_v6 = vpop.permute.xlu0 %30 }
  0x7e   :  { %v38_v8 = vmul.f32 %v70_v5, %v31_v6 }
  0x80   :  { %v42_v11 = vsel %vm40_vm0, %v38_v8, 1e+30 }
  0x81   :  { %v36_v9 = vpop.permute.xlu0 %35 }
  0x82   :  { %v39_v10 = vmul.f32 %v71_v7, %v36_v9 }
  0x84   :  { %v43_v12 = vsel %vm41_vm1, %v39_v10, 1e+30 }
  0x85   :  { %v45_v13 = vmin.f32 %v42_v11, %v43_v12 }
  0x87   :  { %v46_v14 = vrot.slane %v45_v13, 4 }
  0x89   :  { %v47_v15 = vmin.f32 %v45_v13, %v46_v14 }
  0x8b   :  { %v48_v16 = vrot.slane %v47_v15, 2 }
  0x8d   :  { %v49_v17 = vmin.f32 %v47_v15, %v48_v16 }
  0x8f   :  { %v50_v18 = vrot.slane %v49_v17, 1 }
  0x91   :  { %v51_v20 = vmin.f32 %v49_v17, %v50_v18 }
  0x93   :  { %v52_v21 = vmin.f32 %v44_v19, %v51_v20 }
  0x95   :  { %53 = vst [vmem:[#allocation2] sm:$0x1] %v52_v21 }
  0x9c   :  { %v57_v23 = vld [vmem:[#allocation2] sm:$0x1] }
  0x9d   :  { %v60_v24 = vsel %vm59_vm2, %v57_v23, 1.0 }
  0x9e   :  { %v61_v25 = vmax.f32 %v60_v24, 0.0 }
  0xa0   :  { %v62_v26 = vmin.f32 %v61_v25, 1.0 }
  0xa2   :  { %63 = vst [vmem:[%s121_s4] sm:$0x1] %v62_v26 }

// kernel: _sweep.6
= control target key start
LH: loop header
LB: loop body
LE: loop exit
PB: predicated region body
PF: predicated region fallthrough
CT: control target
= control target key end

     0   :  { %v75_v0 = vmov 0   ;;  %v76_v2 = vmov -1e+30   ;;  %s117_s1 = inlined_call_operand.vmem [shape: f32[16,1], index: 1, kind: input, shape index: {}]   ;;  %s118_s3 = inlined_call_operand.vmem [shape: f32[1,128], index: 3, kind: input, shape index: {}]   ;;  %s119_s0 = inlined_call_operand.vmem [shape: bf16[16,128], index: 0, kind: input, shape index: {}]   ;;  %s120_s2 = inlined_call_operand.vmem [shape: f32[1,128], index: 2, kind: input, shape index: {}]   ;;  %s121_s4 = inlined_call_operand.vmem [shape: f32[1,128], index: 4, kind: output, shape index: {}]  }
   0x1   :  { %74 = vset.pattern.permute.xlu0 %v75_v0  ;;  %v26_v1 = vld [vmem:[%s117_s1] sm:$0xff]  ;;  %21 = vst [vmem:[#allocation2] sm:$0x1] %v76_v2  ;;  %v27_v3 = vld [vmem:[%s117_s1 + $0x8] sm:$0xff] }
   0x2   :  { %30 = vperm.xlu0 %74, %v26_v1   ;;  %v69_v4 = vld [vmem:[%s119_s0] sm:$0xff]  }
   0x3   :  { %v70_v5 = vunpack.c.l.bf16 %v69_v4  ;;  %v71_v7 = vunpack.c.h.bf16 %v69_v4  ;;  %v58_v22 = vld [vmem:[%s120_s2] sm:$0x1] }
   0x4   :  { %vm59_vm2 = vcmp.gt.f32.partialorder %v58_v22, 0.0 }
   0x5   :  { %vm40_vm0 = vcmp.gt.f32.partialorder %v70_v5, -1e+29  ;;  %vm41_vm1 = vcmp.gt.f32.partialorder %v71_v7, -1e+29 }
   0x6   :  { %35 = vperm.xlu0 %74, %v27_v3  }
   0x8   :  { %v44_v19 = vld [vmem:[#allocation2] sm:$0x1] }
  0x7d   :  { %v31_v6 = vpop.permute.xlu0 %30 }
  0x7e   :  { %v38_v8 = vmul.f32 %v70_v5, %v31_v6 }
  0x80   :  { %v42_v11 = vsel %vm40_vm0, %v38_v8, -1e+30 }
  0x81   :  { %v36_v9 = vpop.permute.xlu0 %35 }
  0x82   :  { %v39_v10 = vmul.f32 %v71_v7, %v36_v9 }
  0x84   :  { %v43_v12 = vsel %vm41_vm1, %v39_v10, -1e+30 }
  0x85   :  { %v45_v13 = vmax.f32 %v42_v11, %v43_v12 }
  0x87   :  { %v46_v14 = vrot.slane %v45_v13, 4 }
  0x89   :  { %v47_v15 = vmax.f32 %v45_v13, %v46_v14 }
  0x8b   :  { %v48_v16 = vrot.slane %v47_v15, 2 }
  0x8d   :  { %v49_v17 = vmax.f32 %v47_v15, %v48_v16 }
  0x8f   :  { %v50_v18 = vrot.slane %v49_v17, 1 }
  0x91   :  { %v51_v20 = vmax.f32 %v49_v17, %v50_v18 }
  0x93   :  { %v52_v21 = vmax.f32 %v44_v19, %v51_v20 }
  0x95   :  { %53 = vst [vmem:[#allocation2] sm:$0x1] %v52_v21 }
  0x9c   :  { %v57_v23 = vld [vmem:[#allocation2] sm:$0x1] }
  0x9d   :  { %v60_v24 = vsel %vm59_vm2, %v57_v23, 0.0 }
  0x9e   :  { %v61_v25 = vmax.f32 %v60_v24, 0.0 }
  0xa0   :  { %v62_v26 = vmin.f32 %v61_v25, 1.0 }
  0xa2   :  { %63 = vst [vmem:[%s121_s4] sm:$0x1] %v62_v26 }

// kernel: _sweep.7
= control target key start
LH: loop header
LB: loop body
LE: loop exit
PB: predicated region body
PF: predicated region fallthrough
CT: control target
= control target key end

     0   :  { %v97_v0 = vmov 0   ;;  %v98_v5 = vmov 0.0   ;;  %s148_s1 = inlined_call_operand.vmem [shape: f32[32,1], index: 1, kind: input, shape index: {}]   ;;  %s149_s2 = inlined_call_operand.vmem [shape: f32[1,128], index: 2, kind: input, shape index: {}]   ;;  %s150_s0 = inlined_call_operand.vmem [shape: bf16[32,128], index: 0, kind: input, shape index: {}]   ;;  %s151_s3 = inlined_call_operand.vmem [shape: f32[1,128], index: 3, kind: input, shape index: {}]   ;;  %s152_s4 = inlined_call_operand.vmem [shape: f32[1,128], index: 4, kind: output, shape index: {}]  }
   0x1   :  { %96 = vset.pattern.permute.xlu1 %v97_v0  ;;  %95 = vset.pattern.permute.xlu0 %v97_v0  ;;  %v32_v1 = vld [vmem:[%s148_s1 + $0x10] sm:$0xff]  ;;  %v30_v2 = vld [vmem:[%s148_s1] sm:$0xff]  ;;  %v33_v3 = vld [vmem:[%s148_s1 + $0x18] sm:$0xff]  ;;  %21 = vst [vmem:[#allocation2] sm:$0x1] %v98_v5 }
   0x2   :  { %46 = vperm.xlu1 %96, %v32_v1   ;;  %36 = vperm.xlu0 %95, %v30_v2   ;;  %v31_v4 = vld [vmem:[%s148_s1 + $0x8] sm:$0xff]  ;;  %v85_v6 = vld [vmem:[%s150_s0] sm:$0xff]  }
   0x3   :  { %v92_v8 = vld [vmem:[%s150_s0 + $0x8] sm:$0xff]   ;;  %v86_v10 = vunpack.c.l.bf16 %v85_v6  ;;  %v87_v11 = vunpack.c.h.bf16 %v85_v6  ;;  %v74_v31 = vld [vmem:[%s151_s3] sm:$0x1] }
   0x4   :  { %v90_v12 = vunpack.c.l.bf16 %v92_v8  ;;  %v91_v15 = vunpack.c.h.bf16 %v92_v8 }
   0x6   :  { %51 = vperm.xlu1 %96, %v33_v3   ;;  %41 = vperm.xlu0 %95, %v31_v4  }
   0x8   :  { %v58_v28 = vld [vmem:[#allocation2] sm:$0x1] }
  0x7d   :  { %v47_v7 = vpop.permute.xlu1 %46  ;;  %v37_v9 = vpop.permute.xlu0 %36 }
  0x7e   :  { %v54_v14 = vmul.f32 %v86_v10, %v37_v9  ;;  %v56_v18 = vmul.f32 %v90_v12, %v47_v7 }
  0x81   :  { %v42_v13 = vpop.permute.xlu0 %41  ;;  %v52_v17 = vpop.permute.xlu1 %51 }
  0x82   :  { %v55_v16 = vmul.f32 %v87_v11, %v42_v13  ;;  %v57_v20 = vmul.f32 %v91_v15, %v52_v17 }
  0x84   :  { %v59_v19 = vadd.f32 %v55_v16, %v54_v14 }
  0x86   :  { %v60_v21 = vadd.f32 %v59_v19, %v56_v18 }
  0x88   :  { %v61_v22 = vadd.f32 %v60_v21, %v57_v20 }
  0x8a   :  { %v62_v23 = vrot.slane %v61_v22, 4 }
  0x8c   :  { %v63_v24 = vadd.f32 %v62_v23, %v61_v22 }
  0x8e   :  { %v64_v25 = vrot.slane %v63_v24, 2 }
  0x90   :  { %v65_v26 = vadd.f32 %v64_v25, %v63_v24 }
  0x92   :  { %v66_v27 = vrot.slane %v65_v26, 1 }
  0x94   :  { %v67_v29 = vadd.f32 %v66_v27, %v65_v26 }
  0x96   :  { %v68_v30 = vadd.f32 %v67_v29, %v58_v28 }
  0x98   :  { %69 = vst [vmem:[#allocation2] sm:$0x1] %v68_v30 }
  0x9f   :  { %v73_v32 = vld [vmem:[#allocation2] sm:$0x1] }
  0xa0   :  { %vm75_vm0 = vcmp.ge.f32.partialorder %v73_v32, %v74_v31 }
  0xa1   :  { %v83_v33 = vsel %vm75_vm0, 1.0, %v98_v5 }
  0xa2   :  { %78 = vst [vmem:[%s152_s4] sm:$0x1] %v83_v33 }

// kernel: _sweep.9
= control target key start
LH: loop header
LB: loop body
LE: loop exit
PB: predicated region body
PF: predicated region fallthrough
CT: control target
= control target key end

     0   :  { %v79_v0 = vmov 0   ;;  %v80_v2 = vmov -1e+30   ;;  %v81_v26 = vmov 0.0   ;;  %s125_s1 = inlined_call_operand.vmem [shape: f32[16,1], index: 1, kind: input, shape index: {}]   ;;  %s126_s0 = inlined_call_operand.vmem [shape: bf16[16,128], index: 0, kind: input, shape index: {}]   ;;  %s127_s2 = inlined_call_operand.vmem [shape: f32[1,128], index: 2, kind: input, shape index: {}]   ;;  %s128_s3 = inlined_call_operand.vmem [shape: f32[1,128], index: 3, kind: input, shape index: {}]   ;;  %s129_s4 = inlined_call_operand.vmem [shape: f32[1,128], index: 4, kind: output, shape index: {}]  }
   0x1   :  { %78 = vset.pattern.permute.xlu0 %v79_v0  ;;  %v26_v1 = vld [vmem:[%s125_s1] sm:$0xff]  ;;  %21 = vst [vmem:[#allocation2] sm:$0x1] %v80_v2  ;;  %v27_v3 = vld [vmem:[%s125_s1 + $0x8] sm:$0xff] }
   0x2   :  { %30 = vperm.xlu0 %78, %v26_v1   ;;  %v72_v4 = vld [vmem:[%s126_s0] sm:$0xff]  }
   0x3   :  { %v73_v5 = vunpack.c.l.bf16 %v72_v4  ;;  %v74_v7 = vunpack.c.h.bf16 %v72_v4  ;;  %v58_v22 = vld [vmem:[%s127_s2] sm:$0x1] }
   0x4   :  { %vm59_vm2 = vcmp.gt.f32.partialorder %v58_v22, 0.0  ;;  %v61_v23 = vld [vmem:[%s128_s3] sm:$0x1] }
   0x5   :  { %vm40_vm0 = vcmp.gt.f32.partialorder %v73_v5, -1e+29  ;;  %vm41_vm1 = vcmp.gt.f32.partialorder %v74_v7, -1e+29 }
   0x6   :  { %35 = vperm.xlu0 %78, %v27_v3  }
   0x8   :  { %v44_v19 = vld [vmem:[#allocation2] sm:$0x1] }
  0x7d   :  { %v31_v6 = vpop.permute.xlu0 %30 }
  0x7e   :  { %v38_v8 = vmul.f32 %v73_v5, %v31_v6 }
  0x80   :  { %v42_v11 = vsel %vm40_vm0, %v38_v8, -1e+30 }
  0x81   :  { %v36_v9 = vpop.permute.xlu0 %35 }
  0x82   :  { %v39_v10 = vmul.f32 %v74_v7, %v36_v9 }
  0x84   :  { %v43_v12 = vsel %vm41_vm1, %v39_v10, -1e+30 }
  0x85   :  { %v45_v13 = vmax.f32 %v42_v11, %v43_v12 }
  0x87   :  { %v46_v14 = vrot.slane %v45_v13, 4 }
  0x89   :  { %v47_v15 = vmax.f32 %v45_v13, %v46_v14 }
  0x8b   :  { %v48_v16 = vrot.slane %v47_v15, 2 }
  0x8d   :  { %v49_v17 = vmax.f32 %v47_v15, %v48_v16 }
  0x8f   :  { %v50_v18 = vrot.slane %v49_v17, 1 }
  0x91   :  { %v51_v20 = vmax.f32 %v49_v17, %v50_v18 }
  0x93   :  { %v52_v21 = vmax.f32 %v44_v19, %v51_v20 }
  0x95   :  { %53 = vst [vmem:[#allocation2] sm:$0x1] %v52_v21 }
  0x9c   :  { %v57_v24 = vld [vmem:[#allocation2] sm:$0x1] }
  0x9d   :  { %v60_v25 = vsel %vm59_vm2, %v57_v24, 0.0 }
  0x9e   :  { %vm62_vm3 = vcmp.ge.f32.partialorder %v60_v25, %v61_v23 }
  0x9f   :  { %v70_v27 = vsel %vm62_vm3, 1.0, %v81_v26 }
  0xa0   :  { %65 = vst [vmem:[%s129_s4] sm:$0x1] %v70_v27 }

// kernel: _sweep.8
= control target key start
LH: loop header
LB: loop body
LE: loop exit
PB: predicated region body
PF: predicated region fallthrough
CT: control target
= control target key end

     0   :  { %v79_v0 = vmov 0   ;;  %v80_v2 = vmov 1e+30   ;;  %v81_v26 = vmov 0.0   ;;  %s125_s1 = inlined_call_operand.vmem [shape: f32[16,1], index: 1, kind: input, shape index: {}]   ;;  %s126_s0 = inlined_call_operand.vmem [shape: bf16[16,128], index: 0, kind: input, shape index: {}]   ;;  %s127_s2 = inlined_call_operand.vmem [shape: f32[1,128], index: 2, kind: input, shape index: {}]   ;;  %s128_s3 = inlined_call_operand.vmem [shape: f32[1,128], index: 3, kind: input, shape index: {}]   ;;  %s129_s4 = inlined_call_operand.vmem [shape: f32[1,128], index: 4, kind: output, shape index: {}]  }
   0x1   :  { %78 = vset.pattern.permute.xlu0 %v79_v0  ;;  %v26_v1 = vld [vmem:[%s125_s1] sm:$0xff]  ;;  %21 = vst [vmem:[#allocation2] sm:$0x1] %v80_v2  ;;  %v27_v3 = vld [vmem:[%s125_s1 + $0x8] sm:$0xff] }
   0x2   :  { %30 = vperm.xlu0 %78, %v26_v1   ;;  %v72_v4 = vld [vmem:[%s126_s0] sm:$0xff]  }
   0x3   :  { %v73_v5 = vunpack.c.l.bf16 %v72_v4  ;;  %v74_v7 = vunpack.c.h.bf16 %v72_v4  ;;  %v58_v22 = vld [vmem:[%s127_s2] sm:$0x1] }
   0x4   :  { %vm59_vm2 = vcmp.gt.f32.partialorder %v58_v22, 0.0  ;;  %v61_v23 = vld [vmem:[%s128_s3] sm:$0x1] }
   0x5   :  { %vm40_vm0 = vcmp.lt.f32.partialorder %v73_v5, 1e+29  ;;  %vm41_vm1 = vcmp.lt.f32.partialorder %v74_v7, 1e+29 }
   0x6   :  { %35 = vperm.xlu0 %78, %v27_v3  }
   0x8   :  { %v44_v19 = vld [vmem:[#allocation2] sm:$0x1] }
  0x7d   :  { %v31_v6 = vpop.permute.xlu0 %30 }
  0x7e   :  { %v38_v8 = vmul.f32 %v73_v5, %v31_v6 }
  0x80   :  { %v42_v11 = vsel %vm40_vm0, %v38_v8, 1e+30 }
  0x81   :  { %v36_v9 = vpop.permute.xlu0 %35 }
  0x82   :  { %v39_v10 = vmul.f32 %v74_v7, %v36_v9 }
  0x84   :  { %v43_v12 = vsel %vm41_vm1, %v39_v10, 1e+30 }
  0x85   :  { %v45_v13 = vmin.f32 %v42_v11, %v43_v12 }
  0x87   :  { %v46_v14 = vrot.slane %v45_v13, 4 }
  0x89   :  { %v47_v15 = vmin.f32 %v45_v13, %v46_v14 }
  0x8b   :  { %v48_v16 = vrot.slane %v47_v15, 2 }
  0x8d   :  { %v49_v17 = vmin.f32 %v47_v15, %v48_v16 }
  0x8f   :  { %v50_v18 = vrot.slane %v49_v17, 1 }
  0x91   :  { %v51_v20 = vmin.f32 %v49_v17, %v50_v18 }
  0x93   :  { %v52_v21 = vmin.f32 %v44_v19, %v51_v20 }
  0x95   :  { %53 = vst [vmem:[#allocation2] sm:$0x1] %v52_v21 }
  0x9c   :  { %v57_v24 = vld [vmem:[#allocation2] sm:$0x1] }
  0x9d   :  { %v60_v25 = vsel %vm59_vm2, %v57_v24, 0.0 }
  0x9e   :  { %vm62_vm3 = vcmp.ge.f32.partialorder %v60_v25, %v61_v23 }
  0x9f   :  { %v70_v27 = vsel %vm62_vm3, 1.0, %v81_v26 }
  0xa0   :  { %65 = vst [vmem:[%s129_s4] sm:$0x1] %v70_v27 }

</bundles_post_ra>
